<compile_context>
chip_gen: v7x
topology: tpu7x:2x2x1
jax: 0.10.0
libtpu: 0.0.40
codegen_flags: <defaults>
</compile_context>

<pallas_src>
import functools

import jax
import jax.numpy as jnp
from jax import lax
from jax.experimental import pallas as pl
from jax.experimental.pallas import tpu as pltpu

LN_EPS = 1e-5


def _round_up(x, m):
    return ((x + m - 1) // m) * m


def _vmem_limit_bytes():
    """Per-generation scoped-VMEM request with headroom for compiler scratch."""
    cap = 128 * 1024 * 1024
    try:
        info = pltpu.get_tpu_info()
        cap = int(getattr(info, "vmem_capacity_bytes", cap))
    except Exception:
        pass
    # 128 MiB (v5e/v6e) -> 112 MiB; 64 MiB (v7x) -> 48 MiB.
    return int(max(cap - 16 * 1024 * 1024, (cap * 3) // 4))


def _choose_tile_b(B, tile_b_max=512):
    """Largest batch tile (mult. of 8) that minimizes padded rows; then make
    sure there are >=2 grid steps when possible so v7x dual-TC can shard the
    'parallel' batch axis (extra ~0.35us step is negligible on 1-TC chips)."""
    Bp8 = _round_up(B, 8)
    best_t, best_bp = None, None
    for t in (512, 384, 256, 128, 64, 32, 16, 8):
        if t > max(tile_b_max, 8):
            continue
        bp = _round_up(Bp8, t)
        if best_t is None or (bp, -t) < (best_bp, -best_t):
            best_t, best_bp = t, bp
    if best_bp == best_t and best_t >= 16 and (best_t // 2) % 8 == 0:
        best_t //= 2
    return best_t, best_bp


def prepare_params(w_fc, b_fc, w_sc, b_sc, gamma, beta):
    """One-time (parameter-load time) fusion + lane padding + f32 pre-cast.

    w_*: (Fin, Fout)  [PyTorch Linear weight transposed], b_*/gamma/beta: (1, Fout).
    """
    Fin, Fout = w_fc.shape
    Fp = _round_up(Fout, 128)                     # lane-dense feature width
    pad_f = Fp - Fout
    w_fused = jnp.concatenate(
        [jnp.pad(w_fc, ((0, 0), (0, pad_f))),
         jnp.pad(w_sc, ((0, 0), (0, pad_f)))], axis=1)                 # (Fin, 2*Fp)
    b_fused = jnp.concatenate(
        [jnp.pad(b_fc, ((0, 0), (0, pad_f))),
         jnp.pad(b_sc, ((0, 0), (0, pad_f)))], axis=1).astype(jnp.float32)
    gamma_p = jnp.pad(gamma, ((0, 0), (0, pad_f))).astype(jnp.float32)  # (1, Fp)
    beta_p = jnp.pad(beta, ((0, 0), (0, pad_f))).astype(jnp.float32)    # (1, Fp)
    return {"w_fused": w_fused, "b_fused": b_fused, "gamma": gamma_p,
            "beta": beta_p, "fin": Fin, "fout": Fout, "fp": Fp}


def residual_mlp_block_kernel(x_ref, w_ref, b_ref, gamma_ref, beta_ref, o_ref,
                              *, fout, fp):
    # One fused MXU matmul: y[:, :fp] = fc branch, y[:, fp:] = shortcut branch.
    # Operands in native dtype, f32 accumulation.
    y = jnp.dot(x_ref[...], w_ref[...], preferred_element_type=jnp.float32)
    y = y + b_ref[...]                     # bias pre-cast to f32 host-side

    h = y[:, :fp]                          # lane-tile-aligned slice (fp % 128 == 0)
    res = y[:, fp:]

    # Single-pass LayerNorm statistics over the real Fout features.
    # Padded columns of h are exactly zero (zero-padded W and b), so no masks
    # are needed; var is clamped to guard E[x^2]-mean^2 cancellation (f32).
    inv_f = 1.0 / fout
    s = jnp.sum(h, axis=-1, keepdims=True)
    s2 = jnp.sum(h * h, axis=-1, keepdims=True)
    mean = s * inv_f
    var = jnp.maximum(s2 * inv_f - mean * mean, 0.0)

    hn = (h - mean) * lax.rsqrt(var + LN_EPS)
    hn = hn * gamma_ref[...] + beta_ref[...]

    # ReLU (dropout == identity in eval mode), residual add, final ReLU.
    out = jnp.maximum(jnp.maximum(hn, 0.0) + res, 0.0)
    o_ref[...] = out.astype(o_ref.dtype)


def _pallas_forward(x_p, params, tile_b, Bp, out_dtype, single_buffer_weights):
    Fin, Fout, Fp = params["fin"], params["fout"], params["fp"]
    kernel = functools.partial(residual_mlp_block_kernel, fout=Fout, fp=Fp)

    # Resident operands (same block every grid step): single-buffer them.
    resident = {"pipeline_mode": pl.Buffered(1)} if single_buffer_weights else {}

    itemsize = jnp.dtype(out_dtype).itemsize
    cost = pl.CostEstimate(
        flops=2 * Bp * Fin * (2 * Fp),
        transcendentals=Bp,                                  # rsqrt per row
        bytes_accessed=(Bp * Fin + Fin * 2 * Fp + 4 * Fp + Bp * Fp) * itemsize,
    )

    return pl.pallas_call(
        kernel,
        out_shape=jax.ShapeDtypeStruct((Bp, Fp), out_dtype),
        grid_spec=pltpu.PrefetchScalarGridSpec(
            num_scalar_prefetch=0,
            grid=(Bp // tile_b,),
            in_specs=[
                pl.BlockSpec((tile_b, Fin), lambda i: (i, 0)),            # x tile
                pl.BlockSpec((Fin, 2 * Fp), lambda i: (0, 0), **resident),  # fused W
                pl.BlockSpec((1, 2 * Fp), lambda i: (0, 0), **resident),    # fused bias
                pl.BlockSpec((1, Fp), lambda i: (0, 0), **resident),        # gamma
                pl.BlockSpec((1, Fp), lambda i: (0, 0), **resident),        # beta
            ],
            out_specs=pl.BlockSpec((tile_b, Fp), lambda i: (i, 0)),
        ),
        compiler_params=pltpu.CompilerParams(
            dimension_semantics=("parallel",),
            vmem_limit_bytes=_vmem_limit_bytes(),
        ),
        cost_estimate=cost,
    )(x_p, params["w_fused"], params["b_fused"], params["gamma"], params["beta"])


def residual_mlp_block(x, params, *, tile_b_max=512, trim=True):
    """x: (B, Fin); params from prepare_params(). Returns (B, Fout) if trim."""
    B, Fin = x.shape
    assert Fin == params["fin"]
    Fout, Fp = params["fout"], params["fp"]

    tile_b, Bp = _choose_tile_b(B, tile_b_max)
    x_p = x if Bp == B else jnp.pad(x, ((0, Bp - B), (0, 0)))

    try:
        out_full = _pallas_forward(x_p, params, tile_b, Bp, x.dtype, True)
    except Exception:
        # Fallback without Buffered(1) in case the installed jax rejects it.
        out_full = _pallas_forward(x_p, params, tile_b, Bp, x.dtype, False)

    if trim and (Bp != B or Fp != Fout):
        # NOTE: padded batch rows have var~=0 (rsqrt(eps) is large but finite);
        # they are discarded here, so do not remove this slice casually.
        return out_full[:B, :Fout]
    return out_full


def reference(x, w_fc, b_fc, w_sc, b_sc, gamma, beta):
    """Pure-JAX reference of the PyTorch forward (eval mode)."""
    res = x @ w_sc + b_sc
    h = x @ w_fc + b_fc
    mean = jnp.mean(h, axis=-1, keepdims=True)
    var = jnp.mean((h - mean) ** 2, axis=-1, keepdims=True)
    h = (h - mean) / jnp.sqrt(var + LN_EPS) * gamma + beta
    h = jnp.maximum(h, 0.0)
    return jnp.maximum(h + res, 0.0)


if __name__ == "__main__":
    key = jax.random.PRNGKey(0)
    B, Fin, Fout = 8, 32, 64   # in_features != out_features -> Linear shortcut

    k_x, k_fc, k_sc, k_bfc, k_bsc, k_g, k_b = jax.random.split(key, 7)

    # kaiming_normal_(mode='fan_in', nonlinearity='relu'): std = sqrt(2/fan_in)
    std = (2.0 / Fin) ** 0.5
    # PyTorch Linear weight is (out, in); stored transposed (in, out) here.
    w_fc = jax.random.normal(k_fc, (Fin, Fout), jnp.float32) * std
    w_sc = jax.random.normal(k_sc, (Fin, Fout), jnp.float32) * std
    # Module inits biases to 0 / LN to (1, 0); use small nonzero values to
    # exercise every term of the kernel (semantics are identical).
    b_fc = jax.random.normal(k_bfc, (1, Fout), jnp.float32) * 0.1
    b_sc = jax.random.normal(k_bsc, (1, Fout), jnp.float32) * 0.1
    gamma = 1.0 + jax.random.normal(k_g, (1, Fout), jnp.float32) * 0.1
    beta = jax.random.normal(k_b, (1, Fout), jnp.float32) * 0.1

    x = jax.random.normal(k_x, (B, Fin), jnp.float32)

    # One-time parameter preparation (fusion/padding/f32 pre-cast).
    params = prepare_params(w_fc, b_fc, w_sc, b_sc, gamma, beta)

    out = residual_mlp_block(x, params)
    out = jax.block_until_ready(out)

    ref = reference(x, w_fc, b_fc, w_sc, b_sc, gamma, beta)
    assert out.shape == (B, Fout)
    assert jnp.allclose(out, ref, atol=1e-4, rtol=1e-4), "mismatch vs reference"

    print("KERNEL_OK")
</pallas_src>

<mosaic_0001>
module attributes {stable_mosaic.version = 11 : i64} {
  func.func @residual_mlp_block_kernel(%arg0: i32, %arg1: memref<8x32xf32, #tpu.memory_space<vmem>>, %arg2: memref<32x256xf32, #tpu.memory_space<vmem>>, %arg3: memref<1x256xf32, #tpu.memory_space<vmem>>, %arg4: memref<1x128xf32, #tpu.memory_space<vmem>>, %arg5: memref<1x128xf32, #tpu.memory_space<vmem>>, %arg6: memref<8x128xf32, #tpu.memory_space<vmem>>) attributes {dimension_semantics = [#tpu.dimension_semantics<parallel>], iteration_bounds = array<i64: 1>, scalar_prefetch = 0 : i64, scratch_operands = 0 : i64, tpu.core_type = #tpu.core_type<tc>, window_params = [{transform_indices = @transform_0, window_bounds = array<i64: 8, 32>}, {pipeline_mode = #tpu.pipeline_mode<synchronous>, transform_indices = @transform_1, window_bounds = array<i64: 32, 256>}, {pipeline_mode = #tpu.pipeline_mode<synchronous>, transform_indices = @transform_2, window_bounds = array<i64: 1, 256>}, {pipeline_mode = #tpu.pipeline_mode<synchronous>, transform_indices = @transform_3, window_bounds = array<i64: 1, 128>}, {pipeline_mode = #tpu.pipeline_mode<synchronous>, transform_indices = @transform_4, window_bounds = array<i64: 1, 128>}, {transform_indices = @transform_5, window_bounds = array<i64: 8, 128>}]} {
    %c0 = arith.constant 0 : index
    %c0_0 = arith.constant 0 : index
    %0 = vector.load %arg1[%c0, %c0_0] : memref<8x32xf32, #tpu.memory_space<vmem>>, vector<8x32xf32>
    %c0_1 = arith.constant 0 : index
    %c0_2 = arith.constant 0 : index
    %1 = vector.load %arg2[%c0_1, %c0_2] : memref<32x256xf32, #tpu.memory_space<vmem>>, vector<32x256xf32>
    %cst = arith.constant dense<0.000000e+00> : vector<8x256xf32>
    %2 = tpu.matmul %0, %1, %cst {dimension_numbers = #tpu.dot_dimension_numbers<[1], [0], [0], [1], [0, 0, 1, 1], [], []>} : vector<8x32xf32>, vector<32x256xf32>, vector<8x256xf32> -> vector<8x256xf32>
    %c0_3 = arith.constant 0 : index
    %c0_4 = arith.constant 0 : index
    %3 = vector.load %arg3[%c0_3, %c0_4] : memref<1x256xf32, #tpu.memory_space<vmem>>, vector<1x256xf32>
    %4 = vector.broadcast %3 : vector<1x256xf32> to vector<8x256xf32>
    %5 = arith.addf %2, %4 : vector<8x256xf32>
    %6 = vector.extract_strided_slice %5 {offsets = [0, 0], sizes = [8, 128], strides = [1, 1]} : vector<8x256xf32> to vector<8x128xf32>
    %7 = vector.extract_strided_slice %5 {offsets = [0, 128], sizes = [8, 128], strides = [1, 1]} : vector<8x256xf32> to vector<8x128xf32>
    %cst_5 = arith.constant dense<0.000000e+00> : vector<8xf32>
    %8 = vector.multi_reduction <add>, %6, %cst_5 [1] : vector<8x128xf32> to vector<8xf32>
    %9 = vector.shape_cast %8 : vector<8xf32> to vector<8x1xf32>
    %10 = arith.mulf %6, %6 : vector<8x128xf32>
    %cst_6 = arith.constant dense<0.000000e+00> : vector<8xf32>
    %11 = vector.multi_reduction <add>, %10, %cst_6 [1] : vector<8x128xf32> to vector<8xf32>
    %12 = vector.shape_cast %11 : vector<8xf32> to vector<8x1xf32>
    %cst_7 = arith.constant 1.562500e-02 : f32
    %13 = vector.broadcast %cst_7 : f32 to vector<8x1xf32>
    %14 = arith.mulf %9, %13 : vector<8x1xf32>
    %cst_8 = arith.constant 1.562500e-02 : f32
    %15 = vector.broadcast %cst_8 : f32 to vector<8x1xf32>
    %16 = arith.mulf %12, %15 : vector<8x1xf32>
    %17 = arith.mulf %14, %14 : vector<8x1xf32>
    %18 = arith.subf %16, %17 : vector<8x1xf32>
    %cst_9 = arith.constant 0.000000e+00 : f32
    %19 = vector.broadcast %cst_9 : f32 to vector<8x1xf32>
    %20 = arith.maximumf %18, %19 : vector<8x1xf32>
    %21 = vector.broadcast %14 : vector<8x1xf32> to vector<8x128xf32>
    %22 = arith.subf %6, %21 : vector<8x128xf32>
    %cst_10 = arith.constant 9.99999974E-6 : f32
    %23 = vector.broadcast %cst_10 : f32 to vector<8x1xf32>
    %24 = arith.addf %20, %23 : vector<8x1xf32>
    %25 = math.rsqrt %24 : vector<8x1xf32>
    %26 = vector.broadcast %25 : vector<8x1xf32> to vector<8x128xf32>
    %27 = arith.mulf %22, %26 : vector<8x128xf32>
    %c0_11 = arith.constant 0 : index
    %c0_12 = arith.constant 0 : index
    %28 = vector.load %arg4[%c0_11, %c0_12] : memref<1x128xf32, #tpu.memory_space<vmem>>, vector<1x128xf32>
    %29 = vector.broadcast %28 : vector<1x128xf32> to vector<8x128xf32>
    %30 = arith.mulf %27, %29 : vector<8x128xf32>
    %c0_13 = arith.constant 0 : index
    %c0_14 = arith.constant 0 : index
    %31 = vector.load %arg5[%c0_13, %c0_14] : memref<1x128xf32, #tpu.memory_space<vmem>>, vector<1x128xf32>
    %32 = vector.broadcast %31 : vector<1x128xf32> to vector<8x128xf32>
    %33 = arith.addf %30, %32 : vector<8x128xf32>
    %cst_15 = arith.constant 0.000000e+00 : f32
    %34 = vector.broadcast %cst_15 : f32 to vector<8x128xf32>
    %35 = arith.maximumf %33, %34 : vector<8x128xf32>
    %36 = arith.addf %35, %7 : vector<8x128xf32>
    %cst_16 = arith.constant 0.000000e+00 : f32
    %37 = vector.broadcast %cst_16 : f32 to vector<8x128xf32>
    %38 = arith.maximumf %36, %37 : vector<8x128xf32>
    %c0_17 = arith.constant 0 : index
    %c0_18 = arith.constant 0 : index
    %39 = vector.load %arg6[%c0_17, %c0_18] : memref<8x128xf32, #tpu.memory_space<vmem>>, vector<8x128xf32>
    tpu.vector_store %arg6[%c0_17, %c0_18], %38 {strides = array<i32>} : memref<8x128xf32, #tpu.memory_space<vmem>>, vector<8x128xf32>,
    return
  }
  func.func @transform_0(%arg0: i32) -> (i32, i32) {
    %c0_i32 = arith.constant 0 : i32
    %c0_i32_0 = arith.constant 0 : i32
    return %arg0, %c0_i32 : i32, i32
  }
  func.func @transform_1(%arg0: i32) -> (i32, i32) {
    %c0_i32 = arith.constant 0 : i32
    %c0_i32_0 = arith.constant 0 : i32
    %c0_i32_1 = arith.constant 0 : i32
    return %c0_i32, %c0_i32_0 : i32, i32
  }
  func.func @transform_2(%arg0: i32) -> (i32, i32) {
    %c0_i32 = arith.constant 0 : i32
    %c0_i32_0 = arith.constant 0 : i32
    %c0_i32_1 = arith.constant 0 : i32
    return %c0_i32, %c0_i32_0 : i32, i32
  }
  func.func @transform_3(%arg0: i32) -> (i32, i32) {
    %c0_i32 = arith.constant 0 : i32
    %c0_i32_0 = arith.constant 0 : i32
    %c0_i32_1 = arith.constant 0 : i32
    return %c0_i32, %c0_i32_0 : i32, i32
  }
  func.func @transform_4(%arg0: i32) -> (i32, i32) {
    %c0_i32 = arith.constant 0 : i32
    %c0_i32_0 = arith.constant 0 : i32
    %c0_i32_1 = arith.constant 0 : i32
    return %c0_i32, %c0_i32_0 : i32, i32
  }
  func.func @transform_5(%arg0: i32) -> (i32, i32) {
    %c0_i32 = arith.constant 0 : i32
    %c0_i32_0 = arith.constant 0 : i32
    return %arg0, %c0_i32 : i32, i32
  }
}

module attributes {stable_mosaic.version = 11 : i64} {
  func.func @residual_mlp_block_kernel(%arg0: i32, %arg1: memref<8x32xf32, #tpu.memory_space<vmem>>, %arg2: memref<32x256xf32, #tpu.memory_space<vmem>>, %arg3: memref<1x256xf32, #tpu.memory_space<vmem>>, %arg4: memref<1x128xf32, #tpu.memory_space<vmem>>, %arg5: memref<1x128xf32, #tpu.memory_space<vmem>>, %arg6: memref<8x128xf32, #tpu.memory_space<vmem>>) attributes {dimension_semantics = [#tpu.dimension_semantics<parallel>], iteration_bounds = array<i64: 1>, scalar_prefetch = 0 : i64, scratch_operands = 0 : i64, tpu.core_type = #tpu.core_type<tc>, window_params = [{transform_indices = @transform_0, window_bounds = array<i64: 8, 32>}, {pipeline_mode = #tpu.pipeline_mode<synchronous>, transform_indices = @transform_1, window_bounds = array<i64: 32, 256>}, {pipeline_mode = #tpu.pipeline_mode<synchronous>, transform_indices = @transform_2, window_bounds = array<i64: 1, 256>}, {pipeline_mode = #tpu.pipeline_mode<synchronous>, transform_indices = @transform_3, window_bounds = array<i64: 1, 128>}, {pipeline_mode = #tpu.pipeline_mode<synchronous>, transform_indices = @transform_4, window_bounds = array<i64: 1, 128>}, {transform_indices = @transform_5, window_bounds = array<i64: 8, 128>}]} {
    %c0 = arith.constant 0 : index
    %c0_0 = arith.constant 0 : index
    %0 = vector.load %arg1[%c0, %c0_0] : memref<8x32xf32, #tpu.memory_space<vmem>>, vector<8x32xf32>
    %c0_1 = arith.constant 0 : index
    %c0_2 = arith.constant 0 : index
    %1 = vector.load %arg2[%c0_1, %c0_2] : memref<32x256xf32, #tpu.memory_space<vmem>>, vector<32x256xf32>
    %cst = arith.constant dense<0.000000e+00> : vector<8x256xf32>
    %2 = tpu.matmul %0, %1, %cst {dimension_numbers = #tpu.dot_dimension_numbers<[1], [0], [0], [1], [0, 0, 1, 1], [], []>} : vector<8x32xf32>, vector<32x256xf32>, vector<8x256xf32> -> vector<8x256xf32>
    %c0_3 = arith.constant 0 : index
    %c0_4 = arith.constant 0 : index
    %3 = vector.load %arg3[%c0_3, %c0_4] : memref<1x256xf32, #tpu.memory_space<vmem>>, vector<1x256xf32>
    %4 = vector.broadcast %3 : vector<1x256xf32> to vector<8x256xf32>
    %5 = arith.addf %2, %4 : vector<8x256xf32>
    %6 = vector.extract_strided_slice %5 {offsets = [0, 0], sizes = [8, 128], strides = [1, 1]} : vector<8x256xf32> to vector<8x128xf32>
    %7 = vector.extract_strided_slice %5 {offsets = [0, 128], sizes = [8, 128], strides = [1, 1]} : vector<8x256xf32> to vector<8x128xf32>
    %cst_5 = arith.constant dense<0.000000e+00> : vector<8xf32>
    %8 = vector.multi_reduction <add>, %6, %cst_5 [1] : vector<8x128xf32> to vector<8xf32>
    %9 = vector.shape_cast %8 : vector<8xf32> to vector<8x1xf32>
    %10 = arith.mulf %6, %6 : vector<8x128xf32>
    %cst_6 = arith.constant dense<0.000000e+00> : vector<8xf32>
    %11 = vector.multi_reduction <add>, %10, %cst_6 [1] : vector<8x128xf32> to vector<8xf32>
    %12 = vector.shape_cast %11 : vector<8xf32> to vector<8x1xf32>
    %cst_7 = arith.constant 1.562500e-02 : f32
    %13 = vector.broadcast %cst_7 : f32 to vector<8x1xf32>
    %14 = arith.mulf %9, %13 : vector<8x1xf32>
    %cst_8 = arith.constant 1.562500e-02 : f32
    %15 = vector.broadcast %cst_8 : f32 to vector<8x1xf32>
    %16 = arith.mulf %12, %15 : vector<8x1xf32>
    %17 = arith.mulf %14, %14 : vector<8x1xf32>
    %18 = arith.subf %16, %17 : vector<8x1xf32>
    %cst_9 = arith.constant 0.000000e+00 : f32
    %19 = vector.broadcast %cst_9 : f32 to vector<8x1xf32>
    %20 = arith.maximumf %18, %19 : vector<8x1xf32>
    %21 = vector.broadcast %14 : vector<8x1xf32> to vector<8x128xf32>
    %22 = arith.subf %6, %21 : vector<8x128xf32>
    %cst_10 = arith.constant 9.99999974E-6 : f32
    %23 = vector.broadcast %cst_10 : f32 to vector<8x1xf32>
    %24 = arith.addf %20, %23 : vector<8x1xf32>
    %25 = math.rsqrt %24 : vector<8x1xf32>
    %26 = vector.broadcast %25 : vector<8x1xf32> to vector<8x128xf32>
    %27 = arith.mulf %22, %26 : vector<8x128xf32>
    %c0_11 = arith.constant 0 : index
    %c0_12 = arith.constant 0 : index
    %28 = vector.load %arg4[%c0_11, %c0_12] : memref<1x128xf32, #tpu.memory_space<vmem>>, vector<1x128xf32>
    %29 = vector.broadcast %28 : vector<1x128xf32> to vector<8x128xf32>
    %30 = arith.mulf %27, %29 : vector<8x128xf32>
    %c0_13 = arith.constant 0 : index
    %c0_14 = arith.constant 0 : index
    %31 = vector.load %arg5[%c0_13, %c0_14] : memref<1x128xf32, #tpu.memory_space<vmem>>, vector<1x128xf32>
    %32 = vector.broadcast %31 : vector<1x128xf32> to vector<8x128xf32>
    %33 = arith.addf %30, %32 : vector<8x128xf32>
    %cst_15 = arith.constant 0.000000e+00 : f32
    %34 = vector.broadcast %cst_15 : f32 to vector<8x128xf32>
    %35 = arith.maximumf %33, %34 : vector<8x128xf32>
    %36 = arith.addf %35, %7 : vector<8x128xf32>
    %cst_16 = arith.constant 0.000000e+00 : f32
    %37 = vector.broadcast %cst_16 : f32 to vector<8x128xf32>
    %38 = arith.maximumf %36, %37 : vector<8x128xf32>
    %c0_17 = arith.constant 0 : index
    %c0_18 = arith.constant 0 : index
    %39 = vector.load %arg6[%c0_17, %c0_18] : memref<8x128xf32, #tpu.memory_space<vmem>>, vector<8x128xf32>
    tpu.vector_store %arg6[%c0_17, %c0_18], %38 {strides = array<i32>} : memref<8x128xf32, #tpu.memory_space<vmem>>, vector<8x128xf32>,
    return
  }
  func.func @transform_0(%arg0: i32) -> (i32, i32) {
    %c0_i32 = arith.constant 0 : i32
    %c0_i32_0 = arith.constant 0 : i32
    return %arg0, %c0_i32 : i32, i32
  }
  func.func @transform_1(%arg0: i32) -> (i32, i32) {
    %c0_i32 = arith.constant 0 : i32
    %c0_i32_0 = arith.constant 0 : i32
    %c0_i32_1 = arith.constant 0 : i32
    return %c0_i32, %c0_i32_0 : i32, i32
  }
  func.func @transform_2(%arg0: i32) -> (i32, i32) {
    %c0_i32 = arith.constant 0 : i32
    %c0_i32_0 = arith.constant 0 : i32
    %c0_i32_1 = arith.constant 0 : i32
    return %c0_i32, %c0_i32_0 : i32, i32
  }
  func.func @transform_3(%arg0: i32) -> (i32, i32) {
    %c0_i32 = arith.constant 0 : i32
    %c0_i32_0 = arith.constant 0 : i32
    %c0_i32_1 = arith.constant 0 : i32
    return %c0_i32, %c0_i32_0 : i32, i32
  }
  func.func @transform_4(%arg0: i32) -> (i32, i32) {
    %c0_i32 = arith.constant 0 : i32
    %c0_i32_0 = arith.constant 0 : i32
    %c0_i32_1 = arith.constant 0 : i32
    return %c0_i32, %c0_i32_0 : i32, i32
  }
  func.func @transform_5(%arg0: i32) -> (i32, i32) {
    %c0_i32 = arith.constant 0 : i32
    %c0_i32_0 = arith.constant 0 : i32
    return %arg0, %c0_i32 : i32, i32
  }
}

</mosaic_0001>

<bundles_post_ra>
// kernel: tpu_custom_call.1
= control target key start
LH: loop header
LB: loop body
LE: loop exit
PB: predicated region body
PF: predicated region fallthrough
CT: control target
= control target key end

     0   :  { %10 = vsyncpa [#allocation3], 0  ;;  %s501_s0 = inlined_call_operand.hbm [shape: f32[8,32], index: 0, kind: input, shape index: {}]   ;;  %s502_s1 = inlined_call_operand.hbm [shape: f32[32,256], index: 1, kind: input, shape index: {}]   ;;  %s503_s2 = inlined_call_operand.hbm [shape: f32[1,256], index: 2, kind: input, shape index: {}]   ;;  %s504_s3 = inlined_call_operand.hbm [shape: f32[1,128], index: 3, kind: input, shape index: {}]   ;;  %s505_s4 = inlined_call_operand.hbm [shape: f32[1,128], index: 4, kind: input, shape index: {}]   ;;  %s506_s5 = inlined_call_operand.hbm [shape: f32[8,128], index: 5, kind: output, shape index: {}]  }
   0x1   :  { %11 = vsyncpa [#allocation6], 0 }
   0x2   :  { %12 = vsyncpa [#allocation9], 0 }
   0x3   :  { %13 = vsyncpa [#allocation4], 0  ;;  %s390_s18 = smov [#allocation5]   ;;  %s250_s22 = scalar_lea.hbm %s502_s1, 1024 }
   0x4   :  { %s29_s19 = sshll.u32 %s390_s18, 4  ;;  %p251_p0 = scmp.ne.s32.totalorder %s502_s1, %s250_s22  ;;  %s30_s19 = int_to_ptr.vmem [resolvable:$true] %s29_s19 }
   0x5   :  { %p254_p1 = scmp.lt.u32.totalorder %s250_s22, %s502_s1 }
   0x7   :  { %p256_p2 = pnand %p254_p1, %p251_p0 }
   0x9   :  { %259 = shalt.err (!%p256_p2)
}
   0xa   :  { %s260_s27 = scalar_lea.vmem %s30_s19, 1024  ;;  %p265_p4 = scmp.lt.s32.totalorder %s30_s19, %s30_s19 }
   0xb   :  { %p261_p3 = scmp.ne.s32.totalorder %s30_s19, %s260_s27  ;;  %p266_p5 = scmp.lt.s32.totalorder %s260_s27, %s260_s27 }
   0xd   :  { %p267_p6 = por %p266_p5, %p265_p4 }
   0xf   :  { %p268_p7 = pnand %p267_p6, %p261_p3 }
  0x11   :  { %271 = shalt.err (!%p268_p7)
}
  0x12   :  { %s391_s28 = smov 256   ;;  %s392_s29 = smov 16  }
  0x13   :  { %35 = dma.hbm_to_vmem [thread:$0]  %s502_s1, 1024, %s30_s19, [#allocation6], %s391_s28, %s391_s28, %s392_s29  }
  0x14   :  { %s393_s7 = smov [#allocation8]   ;;  %s394_s9 = smov [#allocation2]  }
  0x15   :  { %s52_s8 = sshll.u32 %s393_s7, 4  ;;  %s20_s10 = sshll.u32 %s394_s9, 4  ;;  %s53_s8 = int_to_ptr.vmem [resolvable:$true] %s52_s8  ;;  %s21_s10 = int_to_ptr.vmem [resolvable:$true] %s20_s10 }
  0x16   :  { %s272_s13 = scalar_lea.hbm %s504_s3, 16 }
  0x17   :  { %p273_p8 = scmp.ne.s32.totalorder %s504_s3, %s272_s13  ;;  %p276_p9 = scmp.lt.u32.totalorder %s272_s13, %s504_s3 }
  0x19   :  { %p278_p10 = pnand %p276_p9, %p273_p8 }
  0x1b   :  { %281 = shalt.err (!%p278_p10)
}
  0x1c   :  { %s282_s1 = scalar_lea.vmem %s53_s8, 16  ;;  %s286_s18 = scalar_lea.vmem %s53_s8, 32 }
  0x1d   :  { %p283_p11 = scmp.ne.s32.totalorder %s53_s8, %s282_s1  ;;  %p287_p12 = scmp.lt.s32.totalorder %s53_s8, %s53_s8 }
  0x1e   :  { %p288_p13 = scmp.lt.s32.totalorder %s286_s18, %s282_s1 }
  0x20   :  { %p289_p0 = por %p288_p13, %p287_p12 }
  0x22   :  { %p290_p1 = pnand %p289_p0, %p283_p11 }
  0x24   :  { %293 = shalt.err (!%p290_p1)
}
  0x25   :  { %55 = dma.hbm_to_vmem [thread:$0]  %s504_s3, 16, %s53_s8, [#allocation9]  }
  0x26   :  { %s294_s23 = scalar_lea.hbm %s501_s0, 128 }
  0x27   :  { %p295_p2 = scmp.ne.s32.totalorder %s501_s0, %s294_s23  ;;  %p298_p3 = scmp.lt.u32.totalorder %s294_s23, %s501_s0 }
  0x29   :  { %p300_p4 = pnand %p298_p3, %p295_p2 }
  0x2b   :  { %303 = shalt.err (!%p300_p4)
}
  0x2c   :  { %s304_s28 = scalar_lea.vmem %s21_s10, 128  ;;  %p309_p6 = scmp.lt.s32.totalorder %s21_s10, %s21_s10 }
  0x2d   :  { %p305_p5 = scmp.ne.s32.totalorder %s21_s10, %s304_s28  ;;  %p310_p7 = scmp.lt.s32.totalorder %s304_s28, %s304_s28 }
  0x2f   :  { %p311_p8 = por %p310_p7, %p309_p6 }
  0x31   :  { %p312_p9 = pnand %p311_p8, %p305_p5 }
  0x33   :  { %315 = shalt.err (!%p312_p9)
}
  0x34   :  { %23 = dma.hbm_to_vmem [thread:$0]  %s501_s0, 128, %s21_s10, [#allocation3]  }
  0x35   :  { %s395_s30 = smov [#allocation7]   ;;  %s396_s7 = smov [#allocation10]  }
  0x36   :  { %s42_s6 = sshll.u32 %s395_s30, 4  ;;  %s62_s8 = sshll.u32 %s396_s7, 4  ;;  %s43_s6 = int_to_ptr.vmem [resolvable:$true] %s42_s6  ;;  %s63_s8 = int_to_ptr.vmem [resolvable:$true] %s62_s8 }
  0x37   :  { %s316_s12 = scalar_lea.hbm %s503_s2, 32 }
  0x38   :  { %p317_p10 = scmp.ne.s32.totalorder %s503_s2, %s316_s12  ;;  %p320_p11 = scmp.lt.u32.totalorder %s316_s12, %s503_s2 }
  0x3a   :  { %p322_p12 = pnand %p320_p11, %p317_p10 }
  0x3c   :  { %325 = shalt.err (!%p322_p12)
}
  0x3d   :  { %s326_s0 = scalar_lea.vmem %s43_s6, 32  ;;  %p331_p0 = scmp.lt.s32.totalorder %s43_s6, %s43_s6 }
  0x3e   :  { %p327_p13 = scmp.ne.s32.totalorder %s43_s6, %s326_s0  ;;  %p332_p1 = scmp.lt.s32.totalorder %s326_s0, %s326_s0 }
  0x40   :  { %p333_p2 = por %p332_p1, %p331_p0 }
  0x42   :  { %p334_p3 = pnand %p333_p2, %p327_p13 }
  0x44   :  { %337 = shalt.err (!%p334_p3)
}
  0x45   :  { %45 = dma.hbm_to_vmem [thread:$0]  %s503_s2, 32, %s43_s6, [#allocation6]  }
  0x46   :  { %s338_s19 = scalar_lea.hbm %s505_s4, 16 }
  0x47   :  { %p339_p4 = scmp.ne.s32.totalorder %s505_s4, %s338_s19  ;;  %p342_p5 = scmp.lt.u32.totalorder %s338_s19, %s505_s4 }
  0x49   :  { %p344_p6 = pnand %p342_p5, %p339_p4 }
  0x4b   :  { %347 = shalt.err (!%p344_p6)
}
  0x4c   :  { %s348_s24 = scalar_lea.vmem %s63_s8, 16  ;;  %s352_s25 = scalar_lea.vmem %s63_s8, 32 }
  0x4d   :  { %p349_p7 = scmp.ne.s32.totalorder %s63_s8, %s348_s24  ;;  %p353_p8 = scmp.lt.s32.totalorder %s63_s8, %s63_s8 }
  0x4e   :  { %p354_p9 = scmp.lt.s32.totalorder %s352_s25, %s348_s24 }
  0x50   :  { %p355_p10 = por %p354_p9, %p353_p8 }
  0x52   :  { %p356_p11 = pnand %p355_p10, %p349_p7 }
  0x54   :  { %359 = shalt.err (!%p356_p11)
}
  0x55   :  { %65 = dma.hbm_to_vmem [thread:$0]  %s505_s4, 16, %s63_s8, [#allocation9]  }
  0x56   :  { %382 = dma.done.wait [#allocation3], 128  }
  0x57   :  { %383 = vsyncadd [#allocation3], 4294967168 }
  0x58   :  { %384 = dma.done.wait [#allocation6], 1056  }
  0x59   :  { %385 = vsyncadd [#allocation6], 4294966240 }
  0x5a   :  { %386 = dma.done.wait [#allocation9], 32  }
  0x5b   :  { %387 = vsyncadd [#allocation9], 4294967264  ;;  %v397_v0 = vmov 0.0   ;;  %v83_v1 = vld [vmem:[#allocation5 + $0x8] sm:$0xff]  ;;  %v85_v2 = vld [vmem:[#allocation5 + $0x18] sm:$0xff]  ;;  %vm102_vm0 = vcmask 261120   ;;  %v92_v14 = vlaneseq }
  0x5c   :  { %170 = vmatprep.mubr.f32.mxu0 %v397_v0  ;;  %v82_v3 = vld [vmem:[#allocation5] sm:$0xff]  ;;  %v231_v4 = vpack.c.bf16 %v85_v2, %v83_v1  ;;  %v84_v5 = vld [vmem:[#allocation5 + $0x10] sm:$0xff]  ;;  %v87_v6 = vld [vmem:[#allocation5 + $0x28] sm:$0xff]  ;;  %s398_s4 = smov [#allocation11]  }
  0x5d   :  { %v89_v7 = vld [vmem:[#allocation5 + $0x38] sm:$0xff]  ;;  %v233_v8 = vpack.c.bf16 %v84_v5, %v82_v3  ;;  %v86_v10 = vld [vmem:[#allocation5 + $0x20] sm:$0xff]  ;;  %v88_v11 = vld [vmem:[#allocation5 + $0x30] sm:$0xff]  ;;  %v93_v15 = vshrl.u32 %v92_v14, 7  ;;  %s217_s27 = sshll.u32 %s398_s4, 4  ;;  %s218_s27 = int_to_ptr.vmem [resolvable:$true] %s217_s27 }
  0x5e   :  { %v235_v9 = vpack.c.bf16 %v89_v7, %v87_v6  ;;  %232 = vmatprep.subr.bf16.mxu0 %v231_v4  ;;  %v237_v12 = vpack.c.bf16 %v88_v11, %v86_v10  ;;  %v81_v13 = vld [vmem:[#allocation2] sm:$0xff]  ;;  %v90_v17 = vld [vmem:[#allocation7] sm:$0x3]  ;;  %v229_v34 = vld [vmem:[#allocation8] ss:$0 sm:$0xff]  ;;  %s360_s28 = scalar_lea.vmem %s218_s27, 128  ;;  %p365_p13 = scmp.lt.s32.totalorder %s218_s27, %s218_s27 }
  0x5f   :  { %234 = vmatpush1.bf16.msra.mxu0 %v233_v8  ;;  %v94_v16 = vsub.s32 0, %v93_v15  ;;  %v98_v31 = vsub.s32 1, %v93_v15  ;;  %v230_v36 = vld [vmem:[#allocation10] ss:$0 sm:$0xff]  ;;  %p361_p12 = scmp.ne.s32.totalorder %s218_s27, %s360_s28  ;;  %p366_p0 = scmp.lt.s32.totalorder %s360_s28, %s360_s28 }
  0x60   :  { %236 = vmatprep.subr.bf16.mxu0 %v235_v9 }
  0x61   :  { %v95_v18 = vrot.slane %v90_v17, %v94_v16  ;;  %v99_v37 = vrot.slane %v90_v17, %v98_v31  ;;  %p367_p1 = por %p366_p0, %p365_p13 }
  0x63   :  { %238 = vmatpush1.bf16.msra.mxu0 %v237_v12  ;;  %p368_p2 = pnand %p367_p1, %p361_p12 }
  0x66   :  { %228 = vmatmul.mubr.msk.f32.vlgmr.msra.gmra.mrb[0].mxu0 %vm102_vm0, %v81_v13 }
 0x139   :  { %v172_v19 = vpop.f32.mrb[0].mxu0 }
 0x13a   :  { %v173_v20 = vadd.f32 %v172_v19, %v95_v18  ;;  %v174_v21 = vpop.f32.mrb[1].mxu0 }
 0x13b   :  { %v175_v40 = vadd.f32 %v174_v21, %v99_v37 }
 0x13c   :  { %177 = vadd.xlane.f32.xlu0 %v173_v20  ;;  %v179_v22 = vmul.f32 %v173_v20, %v173_v20 }
 0x140   :  { %180 = vadd.xlane.f32.xlu0 %v179_v22 }
 0x1c9   :  { %v178_v23 = vpop.xlane.xlu0 %177 }
 0x1ca   :  { %v182_v24 = vmul.f32 0.015625, %v178_v23 }
 0x1cc   :  { %v184_v26 = vmul.f32 %v182_v24, %v182_v24  ;;  %v187_v32 = vsub.f32 %v173_v20, %v182_v24 }
 0x1cd   :  { %v181_v25 = vpop.xlane.xlu0 %180 }
 0x1ce   :  { %v183_v27 = vmul.f32 0.015625, %v181_v25 }
 0x1d0   :  { %v185_v28 = vsub.f32 %v183_v27, %v184_v26 }
 0x1d2   :  { %v186_v29 = vmax.f32 %v185_v28, 0.0 }
 0x1d4   :  { %v188_v30 = vadd.f32 1e-05, %v186_v29 }
 0x1d6   :  { %248 = vrsqrt.f32 %v188_v30 }
 0x1e0   :  { %v249_v33 = vpop.eup %248 }
 0x1e1   :  { %v190_v35 = vmul.f32 %v249_v33, %v187_v32 }
 0x1e3   :  { %v198_v38 = vmul.f32 %v229_v34, %v190_v35 }
 0x1e5   :  { %v206_v39 = vadd.f32 %v230_v36, %v198_v38 }
 0x1e7   :  { %v207_v41 = vmax.f32 %v206_v39, 0.0 }
 0x1e9   :  { %v208_v42 = vadd.f32 %v207_v41, %v175_v40 }
 0x1eb   :  { %v209_v43 = vmax.f32 %v208_v42, 0.0 }
 0x1ed   :  { %210 = vst [vmem:[#allocation11] sm:$0xff] %v209_v43 }
 0x1ee   :  { %371 = shalt.err (!%p368_p2)
}
 0x1ef   :  { %s372_s30 = scalar_lea.hbm %s506_s5, 128 }
 0x1f0   :  { %p373_p3 = scmp.ne.s32.totalorder %s506_s5, %s372_s30  ;;  %p376_p4 = scmp.lt.u32.totalorder %s372_s30, %s506_s5 }
 0x1f2   :  { %p378_p5 = pnand %p376_p4, %p373_p3 }
 0x1f4   :  { %381 = shalt.err (!%p378_p5)
}
 0x1f5   :  { %220 = dma.vmem_to_hbm [thread:$0]  %s218_s27, 128, %s506_s5, [#allocation4]  }
 0x1f6   :  { %388 = dma.done.wait [#allocation4], 128  }
 0x1f7   :  { %389 = vsyncadd [#allocation4], 4294967168 }
 0x1f8   :  { %224 = vsyncpa [#allocation3], 1 }
 0x1f9   :  { %225 = vsyncpa [#allocation6], 1 }
 0x1fa   :  { %226 = vsyncpa [#allocation9], 1 }
 0x1fb   :  { %227 = vsyncpa [#allocation4], 1 }

// kernel: tpu_custom_call.1
= control target key start
LH: loop header
LB: loop body
LE: loop exit
PB: predicated region body
PF: predicated region fallthrough
CT: control target
= control target key end

     0   :  { %10 = vsyncpa [#allocation3], 0  ;;  %s501_s0 = inlined_call_operand.hbm [shape: f32[8,32], index: 0, kind: input, shape index: {}]   ;;  %s502_s1 = inlined_call_operand.hbm [shape: f32[32,256], index: 1, kind: input, shape index: {}]   ;;  %s503_s2 = inlined_call_operand.hbm [shape: f32[1,256], index: 2, kind: input, shape index: {}]   ;;  %s504_s3 = inlined_call_operand.hbm [shape: f32[1,128], index: 3, kind: input, shape index: {}]   ;;  %s505_s4 = inlined_call_operand.hbm [shape: f32[1,128], index: 4, kind: input, shape index: {}]   ;;  %s506_s5 = inlined_call_operand.hbm [shape: f32[8,128], index: 5, kind: output, shape index: {}]  }
   0x1   :  { %11 = vsyncpa [#allocation6], 0 }
   0x2   :  { %12 = vsyncpa [#allocation9], 0 }
   0x3   :  { %13 = vsyncpa [#allocation4], 0  ;;  %s390_s18 = smov [#allocation5]   ;;  %s250_s22 = scalar_lea.hbm %s502_s1, 1024 }
   0x4   :  { %s29_s19 = sshll.u32 %s390_s18, 4  ;;  %p251_p0 = scmp.ne.s32.totalorder %s502_s1, %s250_s22  ;;  %s30_s19 = int_to_ptr.vmem [resolvable:$true] %s29_s19 }
   0x5   :  { %p254_p1 = scmp.lt.u32.totalorder %s250_s22, %s502_s1 }
   0x7   :  { %p256_p2 = pnand %p254_p1, %p251_p0 }
   0x9   :  { %259 = shalt.err (!%p256_p2)
}
   0xa   :  { %s260_s27 = scalar_lea.vmem %s30_s19, 1024  ;;  %p265_p4 = scmp.lt.s32.totalorder %s30_s19, %s30_s19 }
   0xb   :  { %p261_p3 = scmp.ne.s32.totalorder %s30_s19, %s260_s27  ;;  %p266_p5 = scmp.lt.s32.totalorder %s260_s27, %s260_s27 }
   0xd   :  { %p267_p6 = por %p266_p5, %p265_p4 }
   0xf   :  { %p268_p7 = pnand %p267_p6, %p261_p3 }
  0x11   :  { %271 = shalt.err (!%p268_p7)
}
  0x12   :  { %s391_s28 = smov 256   ;;  %s392_s29 = smov 16  }
  0x13   :  { %35 = dma.hbm_to_vmem [thread:$0]  %s502_s1, 1024, %s30_s19, [#allocation6], %s391_s28, %s391_s28, %s392_s29  }
  0x14   :  { %s393_s7 = smov [#allocation8]   ;;  %s394_s9 = smov [#allocation2]  }
  0x15   :  { %s52_s8 = sshll.u32 %s393_s7, 4  ;;  %s20_s10 = sshll.u32 %s394_s9, 4  ;;  %s53_s8 = int_to_ptr.vmem [resolvable:$true] %s52_s8  ;;  %s21_s10 = int_to_ptr.vmem [resolvable:$true] %s20_s10 }
  0x16   :  { %s272_s13 = scalar_lea.hbm %s504_s3, 16 }
  0x17   :  { %p273_p8 = scmp.ne.s32.totalorder %s504_s3, %s272_s13  ;;  %p276_p9 = scmp.lt.u32.totalorder %s272_s13, %s504_s3 }
  0x19   :  { %p278_p10 = pnand %p276_p9, %p273_p8 }
  0x1b   :  { %281 = shalt.err (!%p278_p10)
}
  0x1c   :  { %s282_s1 = scalar_lea.vmem %s53_s8, 16  ;;  %s286_s18 = scalar_lea.vmem %s53_s8, 32 }
  0x1d   :  { %p283_p11 = scmp.ne.s32.totalorder %s53_s8, %s282_s1  ;;  %p287_p12 = scmp.lt.s32.totalorder %s53_s8, %s53_s8 }
  0x1e   :  { %p288_p13 = scmp.lt.s32.totalorder %s286_s18, %s282_s1 }
  0x20   :  { %p289_p0 = por %p288_p13, %p287_p12 }
  0x22   :  { %p290_p1 = pnand %p289_p0, %p283_p11 }
  0x24   :  { %293 = shalt.err (!%p290_p1)
}
  0x25   :  { %55 = dma.hbm_to_vmem [thread:$0]  %s504_s3, 16, %s53_s8, [#allocation9]  }
  0x26   :  { %s294_s23 = scalar_lea.hbm %s501_s0, 128 }
  0x27   :  { %p295_p2 = scmp.ne.s32.totalorder %s501_s0, %s294_s23  ;;  %p298_p3 = scmp.lt.u32.totalorder %s294_s23, %s501_s0 }
  0x29   :  { %p300_p4 = pnand %p298_p3, %p295_p2 }
  0x2b   :  { %303 = shalt.err (!%p300_p4)
}
  0x2c   :  { %s304_s28 = scalar_lea.vmem %s21_s10, 128  ;;  %p309_p6 = scmp.lt.s32.totalorder %s21_s10, %s21_s10 }
  0x2d   :  { %p305_p5 = scmp.ne.s32.totalorder %s21_s10, %s304_s28  ;;  %p310_p7 = scmp.lt.s32.totalorder %s304_s28, %s304_s28 }
  0x2f   :  { %p311_p8 = por %p310_p7, %p309_p6 }
  0x31   :  { %p312_p9 = pnand %p311_p8, %p305_p5 }
  0x33   :  { %315 = shalt.err (!%p312_p9)
}
  0x34   :  { %23 = dma.hbm_to_vmem [thread:$0]  %s501_s0, 128, %s21_s10, [#allocation3]  }
  0x35   :  { %s395_s30 = smov [#allocation7]   ;;  %s396_s7 = smov [#allocation10]  }
  0x36   :  { %s42_s6 = sshll.u32 %s395_s30, 4  ;;  %s62_s8 = sshll.u32 %s396_s7, 4  ;;  %s43_s6 = int_to_ptr.vmem [resolvable:$true] %s42_s6  ;;  %s63_s8 = int_to_ptr.vmem [resolvable:$true] %s62_s8 }
  0x37   :  { %s316_s12 = scalar_lea.hbm %s503_s2, 32 }
  0x38   :  { %p317_p10 = scmp.ne.s32.totalorder %s503_s2, %s316_s12  ;;  %p320_p11 = scmp.lt.u32.totalorder %s316_s12, %s503_s2 }
  0x3a   :  { %p322_p12 = pnand %p320_p11, %p317_p10 }
  0x3c   :  { %325 = shalt.err (!%p322_p12)
}
  0x3d   :  { %s326_s0 = scalar_lea.vmem %s43_s6, 32  ;;  %p331_p0 = scmp.lt.s32.totalorder %s43_s6, %s43_s6 }
  0x3e   :  { %p327_p13 = scmp.ne.s32.totalorder %s43_s6, %s326_s0  ;;  %p332_p1 = scmp.lt.s32.totalorder %s326_s0, %s326_s0 }
  0x40   :  { %p333_p2 = por %p332_p1, %p331_p0 }
  0x42   :  { %p334_p3 = pnand %p333_p2, %p327_p13 }
  0x44   :  { %337 = shalt.err (!%p334_p3)
}
  0x45   :  { %45 = dma.hbm_to_vmem [thread:$0]  %s503_s2, 32, %s43_s6, [#allocation6]  }
  0x46   :  { %s338_s19 = scalar_lea.hbm %s505_s4, 16 }
  0x47   :  { %p339_p4 = scmp.ne.s32.totalorder %s505_s4, %s338_s19  ;;  %p342_p5 = scmp.lt.u32.totalorder %s338_s19, %s505_s4 }
  0x49   :  { %p344_p6 = pnand %p342_p5, %p339_p4 }
  0x4b   :  { %347 = shalt.err (!%p344_p6)
}
  0x4c   :  { %s348_s24 = scalar_lea.vmem %s63_s8, 16  ;;  %s352_s25 = scalar_lea.vmem %s63_s8, 32 }
  0x4d   :  { %p349_p7 = scmp.ne.s32.totalorder %s63_s8, %s348_s24  ;;  %p353_p8 = scmp.lt.s32.totalorder %s63_s8, %s63_s8 }
  0x4e   :  { %p354_p9 = scmp.lt.s32.totalorder %s352_s25, %s348_s24 }
  0x50   :  { %p355_p10 = por %p354_p9, %p353_p8 }
  0x52   :  { %p356_p11 = pnand %p355_p10, %p349_p7 }
  0x54   :  { %359 = shalt.err (!%p356_p11)
}
  0x55   :  { %65 = dma.hbm_to_vmem [thread:$0]  %s505_s4, 16, %s63_s8, [#allocation9]  }
  0x56   :  { %382 = dma.done.wait [#allocation3], 128  }
  0x57   :  { %383 = vsyncadd [#allocation3], 4294967168 }
  0x58   :  { %384 = dma.done.wait [#allocation6], 1056  }
  0x59   :  { %385 = vsyncadd [#allocation6], 4294966240 }
  0x5a   :  { %386 = dma.done.wait [#allocation9], 32  }
  0x5b   :  { %387 = vsyncadd [#allocation9], 4294967264  ;;  %v397_v0 = vmov 0.0   ;;  %v83_v1 = vld [vmem:[#allocation5 + $0x8] sm:$0xff]  ;;  %v85_v2 = vld [vmem:[#allocation5 + $0x18] sm:$0xff]  ;;  %vm102_vm0 = vcmask 261120   ;;  %v92_v14 = vlaneseq }
  0x5c   :  { %170 = vmatprep.mubr.f32.mxu0 %v397_v0  ;;  %v82_v3 = vld [vmem:[#allocation5] sm:$0xff]  ;;  %v231_v4 = vpack.c.bf16 %v85_v2, %v83_v1  ;;  %v84_v5 = vld [vmem:[#allocation5 + $0x10] sm:$0xff]  ;;  %v87_v6 = vld [vmem:[#allocation5 + $0x28] sm:$0xff]  ;;  %s398_s4 = smov [#allocation11]  }
  0x5d   :  { %v89_v7 = vld [vmem:[#allocation5 + $0x38] sm:$0xff]  ;;  %v233_v8 = vpack.c.bf16 %v84_v5, %v82_v3  ;;  %v86_v10 = vld [vmem:[#allocation5 + $0x20] sm:$0xff]  ;;  %v88_v11 = vld [vmem:[#allocation5 + $0x30] sm:$0xff]  ;;  %v93_v15 = vshrl.u32 %v92_v14, 7  ;;  %s217_s27 = sshll.u32 %s398_s4, 4  ;;  %s218_s27 = int_to_ptr.vmem [resolvable:$true] %s217_s27 }
  0x5e   :  { %v235_v9 = vpack.c.bf16 %v89_v7, %v87_v6  ;;  %232 = vmatprep.subr.bf16.mxu0 %v231_v4  ;;  %v237_v12 = vpack.c.bf16 %v88_v11, %v86_v10  ;;  %v81_v13 = vld [vmem:[#allocation2] sm:$0xff]  ;;  %v90_v17 = vld [vmem:[#allocation7] sm:$0x3]  ;;  %v229_v34 = vld [vmem:[#allocation8] ss:$0 sm:$0xff]  ;;  %s360_s28 = scalar_lea.vmem %s218_s27, 128  ;;  %p365_p13 = scmp.lt.s32.totalorder %s218_s27, %s218_s27 }
  0x5f   :  { %234 = vmatpush1.bf16.msra.mxu0 %v233_v8  ;;  %v94_v16 = vsub.s32 0, %v93_v15  ;;  %v98_v31 = vsub.s32 1, %v93_v15  ;;  %v230_v36 = vld [vmem:[#allocation10] ss:$0 sm:$0xff]  ;;  %p361_p12 = scmp.ne.s32.totalorder %s218_s27, %s360_s28  ;;  %p366_p0 = scmp.lt.s32.totalorder %s360_s28, %s360_s28 }
  0x60   :  { %236 = vmatprep.subr.bf16.mxu0 %v235_v9 }
  0x61   :  { %v95_v18 = vrot.slane %v90_v17, %v94_v16  ;;  %v99_v37 = vrot.slane %v90_v17, %v98_v31  ;;  %p367_p1 = por %p366_p0, %p365_p13 }
  0x63   :  { %238 = vmatpush1.bf16.msra.mxu0 %v237_v12  ;;  %p368_p2 = pnand %p367_p1, %p361_p12 }
  0x66   :  { %228 = vmatmul.mubr.msk.f32.vlgmr.msra.gmra.mrb[0].mxu0 %vm102_vm0, %v81_v13 }
 0x139   :  { %v172_v19 = vpop.f32.mrb[0].mxu0 }
 0x13a   :  { %v173_v20 = vadd.f32 %v172_v19, %v95_v18  ;;  %v174_v21 = vpop.f32.mrb[1].mxu0 }
 0x13b   :  { %v175_v40 = vadd.f32 %v174_v21, %v99_v37 }
 0x13c   :  { %177 = vadd.xlane.f32.xlu0 %v173_v20  ;;  %v179_v22 = vmul.f32 %v173_v20, %v173_v20 }
 0x140   :  { %180 = vadd.xlane.f32.xlu0 %v179_v22 }
 0x1c9   :  { %v178_v23 = vpop.xlane.xlu0 %177 }
 0x1ca   :  { %v182_v24 = vmul.f32 0.015625, %v178_v23 }
 0x1cc   :  { %v184_v26 = vmul.f32 %v182_v24, %v182_v24  ;;  %v187_v32 = vsub.f32 %v173_v20, %v182_v24 }
 0x1cd   :  { %v181_v25 = vpop.xlane.xlu0 %180 }
 0x1ce   :  { %v183_v27 = vmul.f32 0.015625, %v181_v25 }
 0x1d0   :  { %v185_v28 = vsub.f32 %v183_v27, %v184_v26 }
 0x1d2   :  { %v186_v29 = vmax.f32 %v185_v28, 0.0 }
 0x1d4   :  { %v188_v30 = vadd.f32 1e-05, %v186_v29 }
 0x1d6   :  { %248 = vrsqrt.f32 %v188_v30 }
 0x1e0   :  { %v249_v33 = vpop.eup %248 }
 0x1e1   :  { %v190_v35 = vmul.f32 %v249_v33, %v187_v32 }
 0x1e3   :  { %v198_v38 = vmul.f32 %v229_v34, %v190_v35 }
 0x1e5   :  { %v206_v39 = vadd.f32 %v230_v36, %v198_v38 }
 0x1e7   :  { %v207_v41 = vmax.f32 %v206_v39, 0.0 }
 0x1e9   :  { %v208_v42 = vadd.f32 %v207_v41, %v175_v40 }
 0x1eb   :  { %v209_v43 = vmax.f32 %v208_v42, 0.0 }
 0x1ed   :  { %210 = vst [vmem:[#allocation11] sm:$0xff] %v209_v43 }
 0x1ee   :  { %371 = shalt.err (!%p368_p2)
}
 0x1ef   :  { %s372_s30 = scalar_lea.hbm %s506_s5, 128 }
 0x1f0   :  { %p373_p3 = scmp.ne.s32.totalorder %s506_s5, %s372_s30  ;;  %p376_p4 = scmp.lt.u32.totalorder %s372_s30, %s506_s5 }
 0x1f2   :  { %p378_p5 = pnand %p376_p4, %p373_p3 }
 0x1f4   :  { %381 = shalt.err (!%p378_p5)
}
 0x1f5   :  { %220 = dma.vmem_to_hbm [thread:$0]  %s218_s27, 128, %s506_s5, [#allocation4]  }
 0x1f6   :  { %388 = dma.done.wait [#allocation4], 128  }
 0x1f7   :  { %389 = vsyncadd [#allocation4], 4294967168 }
 0x1f8   :  { %224 = vsyncpa [#allocation3], 1 }
 0x1f9   :  { %225 = vsyncpa [#allocation6], 1 }
 0x1fa   :  { %226 = vsyncpa [#allocation9], 1 }
 0x1fb   :  { %227 = vsyncpa [#allocation4], 1 }

</bundles_post_ra>
